<compile_context>
chip_gen: v7x
topology: tpu7x:2x2x1
jax: 0.10.0
libtpu: 0.0.40
codegen_flags: <defaults>
</compile_context>

<pallas_src>
import functools
import math

import jax
import jax.numpy as jnp
from jax import lax
from jax.experimental import pallas as pl
from jax.experimental.pallas import tpu as pltpu


# ---------------------------------------------------------------------------
# helpers
# ---------------------------------------------------------------------------

def _round_up(n, m):
    return int(pl.cdiv(n, m) * m)


def _vmem_capacity_bytes():
    try:
        return int(getattr(pltpu.get_tpu_info(), "vmem_capacity_bytes", 64 << 20))
    except Exception:
        return 64 << 20


def _vmem_limit_bytes():
    # Raise the scoped-VMEM limit but keep ~25% headroom below physical VMEM.
    return int(min(_vmem_capacity_bytes() * 3 // 4, 96 << 20))


def _pick_tile_rows(rows, embed, hidden, itemsize):
    """Largest row tile (multiple of 8) whose double-buffered activations fit VMEM."""
    cap = _vmem_capacity_bytes()
    weight_bytes = (2 * embed * hidden + 2 * embed + 2 * hidden) * 4  # resident, single copy
    budget = max(cap // 2 - weight_bytes, 1 << 20)
    # per-row bytes: x + out double-buffered, plus f32 temporaries (s, h, centered, ...)
    per_row = 4 * embed * itemsize + (4 * embed + hidden) * 4
    tr = budget // max(per_row, 1)
    tr = int(max(8, min(1024, (tr // 8) * 8)))
    return min(tr, _round_up(rows, 8))


def _layer_norm_f32(s, gamma, beta, eps):
    """LayerNorm over last dim; `s` is f32, biased variance (matches nn.LayerNorm)."""
    mean = jnp.mean(s, axis=-1, keepdims=True)
    centered = s - mean
    var = jnp.mean(centered * centered, axis=-1, keepdims=True)
    return centered * lax.rsqrt(var + eps) * gamma + beta


# Untiled, resident-for-the-whole-call operand (weights, biases, gamma/beta).
_RESIDENT = pl.BlockSpec(memory_space=pltpu.MemorySpace.VMEM)


# ---------------------------------------------------------------------------
# Kernel 1: multi-head attention + W_o + residual + LayerNorm1  (per batch)
# ---------------------------------------------------------------------------

def _attn_addnorm_kernel(x_ref, wq_ref, bq_ref, wk_ref, bk_ref, wv_ref, bv_ref,
                         wo_ref, bo_ref, gamma_ref, beta_ref, o_ref, attn_sc,
                         *, num_heads, head_dim, eps):
    x = x_ref[0].astype(jnp.float32)                                  # (seq, embed)
    wq = wq_ref[...].astype(jnp.float32)
    wk = wk_ref[...].astype(jnp.float32)
    wv = wv_ref[...].astype(jnp.float32)
    wo = wo_ref[...].astype(jnp.float32)

    q = jnp.dot(x, wq, preferred_element_type=jnp.float32) + bq_ref[...].astype(jnp.float32)
    k = jnp.dot(x, wk, preferred_element_type=jnp.float32) + bk_ref[...].astype(jnp.float32)
    v = jnp.dot(x, wv, preferred_element_type=jnp.float32) + bv_ref[...].astype(jnp.float32)

    inv_sqrt_d = 1.0 / math.sqrt(head_dim)
    dn = (((1,), (1,)), ((), ()))                 # contract last dims: q @ k^T
    for h in range(num_heads):                    # static unroll; num_heads is small
        sl = slice(h * head_dim, (h + 1) * head_dim)
        qh, kh, vh = q[:, sl], k[:, sl], v[:, sl]
        s = lax.dot_general(qh, kh, dn, preferred_element_type=jnp.float32) * inv_sqrt_d
        # TODO(synk): optional attention mask (masked_fill == 0 -> -inf) not wired in;
        #             the reference forward is exercised with mask=None.
        s = s - jnp.max(s, axis=-1, keepdims=True)
        p = jnp.exp(s)
        p = p / jnp.sum(p, axis=-1, keepdims=True)
        attn_sc[:, sl] = jnp.dot(p, vh, preferred_element_type=jnp.float32)

    attn_out = jnp.dot(attn_sc[...], wo, preferred_element_type=jnp.float32)
    attn_out = attn_out + bo_ref[...].astype(jnp.float32)

    y = _layer_norm_f32(x + attn_out,
                        gamma_ref[...].astype(jnp.float32),
                        beta_ref[...].astype(jnp.float32), eps)
    o_ref[0] = y.astype(o_ref.dtype)


def _attention_addnorm(x, wq, bq, wk, bk, wv, bv, wo, bo, gamma, beta, *, num_heads, eps):
    batch, seq, embed = x.shape
    head_dim = embed // num_heads
    row2 = lambda a: a.reshape(1, -1)
    kernel = functools.partial(_attn_addnorm_kernel,
                               num_heads=num_heads, head_dim=head_dim, eps=eps)
    return pl.pallas_call(
        kernel,
        out_shape=jax.ShapeDtypeStruct((batch, seq, embed), x.dtype),
        grid_spec=pltpu.PrefetchScalarGridSpec(
            num_scalar_prefetch=0,
            grid=(batch,),
            in_specs=[pl.BlockSpec((1, seq, embed), lambda b: (b, 0, 0))] + [_RESIDENT] * 10,
            out_specs=pl.BlockSpec((1, seq, embed), lambda b: (b, 0, 0)),
            scratch_shapes=[pltpu.VMEM((seq, embed), jnp.float32)],
        ),
        compiler_params=pltpu.CompilerParams(
            dimension_semantics=("parallel",),      # v7x: shard batch across the 2 TCs
            vmem_limit_bytes=_vmem_limit_bytes(),
        ),
    )(x, wq, row2(bq), wk, row2(bk), wv, row2(bv), wo, row2(bo), row2(gamma), row2(beta))


# ---------------------------------------------------------------------------
# Kernel 2: FFN (fc1 -> ReLU -> fc2) + residual + LayerNorm2  (row-tiled)
# ---------------------------------------------------------------------------

def _ffn_addnorm_kernel(x_ref, w1_ref, b1_ref, w2_ref, b2_ref,
                        gamma_ref, beta_ref, o_ref, *, eps):
    x = x_ref[...].astype(jnp.float32)                                # (tile_rows, embed)
    h = jnp.dot(x, w1_ref[...].astype(jnp.float32), preferred_element_type=jnp.float32)
    h = jnp.maximum(h + b1_ref[...].astype(jnp.float32), 0.0)
    y = jnp.dot(h, w2_ref[...].astype(jnp.float32), preferred_element_type=jnp.float32)
    y = y + b2_ref[...].astype(jnp.float32)
    out = _layer_norm_f32(x + y,
                          gamma_ref[...].astype(jnp.float32),
                          beta_ref[...].astype(jnp.float32), eps)
    o_ref[...] = out.astype(o_ref.dtype)


def _ffn_addnorm(x, w1, b1, w2, b2, gamma, beta, *, eps, tile_rows=None):
    batch, seq, embed = x.shape
    hidden = w1.shape[1]
    rows = batch * seq
    x2 = x.reshape(rows, embed)

    if tile_rows is None:
        tile_rows = _pick_tile_rows(rows, embed, hidden, jnp.dtype(x.dtype).itemsize)
    tile_rows = max(8, (int(tile_rows) // 8) * 8)
    rows_padded = _round_up(rows, tile_rows)
    if rows_padded != rows:                         # pad instead of asserting divisibility
        x2 = jnp.pad(x2, ((0, rows_padded - rows), (0, 0)))

    row2 = lambda a: a.reshape(1, -1)
    out = pl.pallas_call(
        functools.partial(_ffn_addnorm_kernel, eps=eps),
        out_shape=jax.ShapeDtypeStruct((rows_padded, embed), x.dtype),
        grid_spec=pltpu.PrefetchScalarGridSpec(
            num_scalar_prefetch=0,
            grid=(rows_padded // tile_rows,),
            in_specs=[pl.BlockSpec((tile_rows, embed), lambda i: (i, 0))] + [_RESIDENT] * 6,
            out_specs=pl.BlockSpec((tile_rows, embed), lambda i: (i, 0)),
        ),
        compiler_params=pltpu.CompilerParams(
            dimension_semantics=("parallel",),
            vmem_limit_bytes=_vmem_limit_bytes(),
        ),
    )(x2, w1, row2(b1), w2, row2(b2), row2(gamma), row2(beta))
    return out[:rows].reshape(batch, seq, embed)


# ---------------------------------------------------------------------------
# TransformerBlock forward
# ---------------------------------------------------------------------------

def transformer_block(x, params, *, num_heads, eps=1e-6, mask=None, tile_rows=None):
    """Forward pass matching the PyTorch TransformerBlock (mask=None path)."""
    if mask is not None:
        raise NotImplementedError("attention mask not supported")  # TODO(synk): mask support
    h = _attention_addnorm(
        x,
        params["wq"], params["bq"], params["wk"], params["bk"],
        params["wv"], params["bv"], params["wo"], params["bo"],
        params["ln1_g"], params["ln1_b"],
        num_heads=num_heads, eps=eps)
    return _ffn_addnorm(
        h,
        params["w1"], params["fb1"], params["w2"], params["fb2"],
        params["ln2_g"], params["ln2_b"],
        eps=eps, tile_rows=tile_rows)


# ---------------------------------------------------------------------------
# Pure-JAX reference (mirrors the PyTorch module, weights stored (in, out))
# ---------------------------------------------------------------------------

def _reference_block(x, p, *, num_heads, eps):
    batch, seq, embed = x.shape
    head_dim = embed // num_heads
    hp = lax.Precision.HIGHEST

    def lin(t, w, b):
        return jnp.dot(t, w, precision=hp) + b

    def split(t):
        return t.reshape(batch, seq, num_heads, head_dim).transpose(0, 2, 1, 3)

    q = split(lin(x, p["wq"], p["bq"]))
    k = split(lin(x, p["wk"], p["bk"]))
    v = split(lin(x, p["wv"], p["bv"]))
    scores = jnp.einsum("bhqd,bhkd->bhqk", q, k, precision=hp) / jnp.sqrt(jnp.float32(head_dim))
    w = jax.nn.softmax(scores, axis=-1)
    attn = jnp.einsum("bhqk,bhkd->bhqd", w, v, precision=hp)
    attn = attn.transpose(0, 2, 1, 3).reshape(batch, seq, embed)
    attn = lin(attn, p["wo"], p["bo"])

    def ln(s, g, b):
        m = jnp.mean(s, -1, keepdims=True)
        var = jnp.mean((s - m) ** 2, -1, keepdims=True)
        return (s - m) / jnp.sqrt(var + eps) * g + b

    h = ln(x + attn, p["ln1_g"], p["ln1_b"])
    f = lin(jnp.maximum(lin(h, p["w1"], p["fb1"]), 0.0), p["w2"], p["fb2"])
    return ln(h + f, p["ln2_g"], p["ln2_b"])


# ---------------------------------------------------------------------------
# self-test
# ---------------------------------------------------------------------------

if __name__ == "__main__":
    batch, seq, embed, num_heads, hidden = 2, 8, 32, 4, 64
    f32 = jnp.float32
    key = jax.random.PRNGKey(0)
    ks = jax.random.split(key, 17)
    sc_e = 1.0 / math.sqrt(embed)
    sc_h = 1.0 / math.sqrt(hidden)

    params = {
        "wq": jax.random.normal(ks[0], (embed, embed), f32) * sc_e,
        "bq": jax.random.normal(ks[1], (embed,), f32) * 0.02,
        "wk": jax.random.normal(ks[2], (embed, embed), f32) * sc_e,
        "bk": jax.random.normal(ks[3], (embed,), f32) * 0.02,
        "wv": jax.random.normal(ks[4], (embed, embed), f32) * sc_e,
        "bv": jax.random.normal(ks[5], (embed,), f32) * 0.02,
        "wo": jax.random.normal(ks[6], (embed, embed), f32) * sc_e,
        "bo": jax.random.normal(ks[7], (embed,), f32) * 0.02,
        "ln1_g": 1.0 + 0.1 * jax.random.normal(ks[8], (embed,), f32),
        "ln1_b": 0.1 * jax.random.normal(ks[9], (embed,), f32),
        "w1": jax.random.normal(ks[10], (embed, hidden), f32) * sc_e,
        "fb1": jax.random.normal(ks[11], (hidden,), f32) * 0.02,
        "w2": jax.random.normal(ks[12], (hidden, embed), f32) * sc_h,
        "fb2": jax.random.normal(ks[13], (embed,), f32) * 0.02,
        "ln2_g": 1.0 + 0.1 * jax.random.normal(ks[14], (embed,), f32),
        "ln2_b": 0.1 * jax.random.normal(ks[15], (embed,), f32),
    }
    x = jax.random.normal(ks[16], (batch, seq, embed), f32)

    out = transformer_block(x, params, num_heads=num_heads, eps=1e-6)
    out = jax.block_until_ready(out)

    ref = _reference_block(x, params, num_heads=num_heads, eps=1e-6)
    assert out.shape == (batch, seq, embed)
    assert jnp.allclose(out, ref, atol=2e-3, rtol=2e-3), (
        "mismatch vs reference: max abs diff = "
        f"{float(jnp.max(jnp.abs(out - ref)))}")
    print("KERNEL_OK")
</pallas_src>

<mosaic_0001>
module attributes {stable_mosaic.version = 11 : i64} {
  func.func @_attn_addnorm_kernel(%arg0: i32, %arg1: memref<1x8x32xf32, #tpu.memory_space<vmem>>, %arg2: memref<32x32xf32, #tpu.memory_space<vmem>>, %arg3: memref<1x32xf32, #tpu.memory_space<vmem>>, %arg4: memref<32x32xf32, #tpu.memory_space<vmem>>, %arg5: memref<1x32xf32, #tpu.memory_space<vmem>>, %arg6: memref<32x32xf32, #tpu.memory_space<vmem>>, %arg7: memref<1x32xf32, #tpu.memory_space<vmem>>, %arg8: memref<32x32xf32, #tpu.memory_space<vmem>>, %arg9: memref<1x32xf32, #tpu.memory_space<vmem>>, %arg10: memref<1x32xf32, #tpu.memory_space<vmem>>, %arg11: memref<1x32xf32, #tpu.memory_space<vmem>>, %arg12: memref<1x8x32xf32, #tpu.memory_space<vmem>>, %arg13: memref<8x32xf32, #tpu.memory_space<vmem>>) attributes {dimension_semantics = [#tpu.dimension_semantics<parallel>], iteration_bounds = array<i64: 2>, scalar_prefetch = 0 : i64, scratch_operands = 1 : i64, tpu.core_type = #tpu.core_type<tc>, window_params = [{transform_indices = @transform_0, window_bounds = array<i64: 1, 8, 32>}, {pipeline_mode = #tpu.pipeline_mode<synchronous>, transform_indices = @transform_1, window_bounds = array<i64: 32, 32>}, {pipeline_mode = #tpu.pipeline_mode<synchronous>, transform_indices = @transform_2, window_bounds = array<i64: 1, 32>}, {pipeline_mode = #tpu.pipeline_mode<synchronous>, transform_indices = @transform_3, window_bounds = array<i64: 32, 32>}, {pipeline_mode = #tpu.pipeline_mode<synchronous>, transform_indices = @transform_4, window_bounds = array<i64: 1, 32>}, {pipeline_mode = #tpu.pipeline_mode<synchronous>, transform_indices = @transform_5, window_bounds = array<i64: 32, 32>}, {pipeline_mode = #tpu.pipeline_mode<synchronous>, transform_indices = @transform_6, window_bounds = array<i64: 1, 32>}, {pipeline_mode = #tpu.pipeline_mode<synchronous>, transform_indices = @transform_7, window_bounds = array<i64: 32, 32>}, {pipeline_mode = #tpu.pipeline_mode<synchronous>, transform_indices = @transform_8, window_bounds = array<i64: 1, 32>}, {pipeline_mode = #tpu.pipeline_mode<synchronous>, transform_indices = @transform_9, window_bounds = array<i64: 1, 32>}, {pipeline_mode = #tpu.pipeline_mode<synchronous>, transform_indices = @transform_10, window_bounds = array<i64: 1, 32>}, {transform_indices = @transform_11, window_bounds = array<i64: 1, 8, 32>}]} {
    %c0 = arith.constant 0 : index
    %c0_0 = arith.constant 0 : index
    %c0_1 = arith.constant 0 : index
    %0 = vector.load %arg1[%c0, %c0_0, %c0_1] : memref<1x8x32xf32, #tpu.memory_space<vmem>>, vector<1x8x32xf32>
    %1 = vector.shape_cast %0 : vector<1x8x32xf32> to vector<8x32xf32>
    %c0_2 = arith.constant 0 : index
    %c0_3 = arith.constant 0 : index
    %2 = vector.load %arg2[%c0_2, %c0_3] : memref<32x32xf32, #tpu.memory_space<vmem>>, vector<32x32xf32>
    %c0_4 = arith.constant 0 : index
    %c0_5 = arith.constant 0 : index
    %3 = vector.load %arg4[%c0_4, %c0_5] : memref<32x32xf32, #tpu.memory_space<vmem>>, vector<32x32xf32>
    %c0_6 = arith.constant 0 : index
    %c0_7 = arith.constant 0 : index
    %4 = vector.load %arg6[%c0_6, %c0_7] : memref<32x32xf32, #tpu.memory_space<vmem>>, vector<32x32xf32>
    %c0_8 = arith.constant 0 : index
    %c0_9 = arith.constant 0 : index
    %5 = vector.load %arg8[%c0_8, %c0_9] : memref<32x32xf32, #tpu.memory_space<vmem>>, vector<32x32xf32>
    %cst = arith.constant dense<0.000000e+00> : vector<8x32xf32>
    %6 = tpu.matmul %1, %2, %cst {dimension_numbers = #tpu.dot_dimension_numbers<[1], [0], [0], [1], [0, 0, 1, 1], [], []>} : vector<8x32xf32>, vector<32x32xf32>, vector<8x32xf32> -> vector<8x32xf32>
    %c0_10 = arith.constant 0 : index
    %c0_11 = arith.constant 0 : index
    %7 = vector.load %arg3[%c0_10, %c0_11] : memref<1x32xf32, #tpu.memory_space<vmem>>, vector<1x32xf32>
    %8 = vector.broadcast %7 : vector<1x32xf32> to vector<8x32xf32>
    %9 = arith.addf %6, %8 : vector<8x32xf32>
    %cst_12 = arith.constant dense<0.000000e+00> : vector<8x32xf32>
    %10 = tpu.matmul %1, %3, %cst_12 {dimension_numbers = #tpu.dot_dimension_numbers<[1], [0], [0], [1], [0, 0, 1, 1], [], []>} : vector<8x32xf32>, vector<32x32xf32>, vector<8x32xf32> -> vector<8x32xf32>
    %c0_13 = arith.constant 0 : index
    %c0_14 = arith.constant 0 : index
    %11 = vector.load %arg5[%c0_13, %c0_14] : memref<1x32xf32, #tpu.memory_space<vmem>>, vector<1x32xf32>
    %12 = vector.broadcast %11 : vector<1x32xf32> to vector<8x32xf32>
    %13 = arith.addf %10, %12 : vector<8x32xf32>
    %cst_15 = arith.constant dense<0.000000e+00> : vector<8x32xf32>
    %14 = tpu.matmul %1, %4, %cst_15 {dimension_numbers = #tpu.dot_dimension_numbers<[1], [0], [0], [1], [0, 0, 1, 1], [], []>} : vector<8x32xf32>, vector<32x32xf32>, vector<8x32xf32> -> vector<8x32xf32>
    %c0_16 = arith.constant 0 : index
    %c0_17 = arith.constant 0 : index
    %15 = vector.load %arg7[%c0_16, %c0_17] : memref<1x32xf32, #tpu.memory_space<vmem>>, vector<1x32xf32>
    %16 = vector.broadcast %15 : vector<1x32xf32> to vector<8x32xf32>
    %17 = arith.addf %14, %16 : vector<8x32xf32>
    %18 = vector.extract_strided_slice %9 {offsets = [0, 0], sizes = [8, 8], strides = [1, 1]} : vector<8x32xf32> to vector<8x8xf32>
    %19 = vector.extract_strided_slice %13 {offsets = [0, 0], sizes = [8, 8], strides = [1, 1]} : vector<8x32xf32> to vector<8x8xf32>
    %20 = vector.extract_strided_slice %17 {offsets = [0, 0], sizes = [8, 8], strides = [1, 1]} : vector<8x32xf32> to vector<8x8xf32>
    %cst_18 = arith.constant dense<0.000000e+00> : vector<8x8xf32>
    %21 = tpu.matmul %18, %19, %cst_18 {dimension_numbers = #tpu.dot_dimension_numbers<[1], [1], [0], [0], [0, 0, 1, 0], [], []>} : vector<8x8xf32>, vector<8x8xf32>, vector<8x8xf32> -> vector<8x8xf32>
    %cst_19 = arith.constant 0.353553385 : f32
    %22 = vector.broadcast %cst_19 : f32 to vector<8x8xf32>
    %23 = arith.mulf %21, %22 : vector<8x8xf32>
    %cst_20 = arith.constant dense<0xFF800000> : vector<8xf32>
    %24 = vector.multi_reduction <maximumf>, %23, %cst_20 [1] : vector<8x8xf32> to vector<8xf32>
    %25 = vector.shape_cast %24 : vector<8xf32> to vector<8x1xf32>
    %26 = vector.broadcast %25 : vector<8x1xf32> to vector<8x8xf32>
    %27 = arith.subf %23, %26 : vector<8x8xf32>
    %28 = math.exp %27 : vector<8x8xf32>
    %cst_21 = arith.constant dense<0.000000e+00> : vector<8xf32>
    %29 = vector.multi_reduction <add>, %28, %cst_21 [1] : vector<8x8xf32> to vector<8xf32>
    %30 = vector.shape_cast %29 : vector<8xf32> to vector<8x1xf32>
    %31 = vector.broadcast %30 : vector<8x1xf32> to vector<8x8xf32>
    %32 = arith.divf %28, %31 : vector<8x8xf32>
    %cst_22 = arith.constant dense<0.000000e+00> : vector<8x8xf32>
    %33 = tpu.matmul %32, %20, %cst_22 {dimension_numbers = #tpu.dot_dimension_numbers<[1], [0], [0], [1], [0, 0, 1, 1], [], []>} : vector<8x8xf32>, vector<8x8xf32>, vector<8x8xf32> -> vector<8x8xf32>
    %c0_23 = arith.constant 0 : index
    %c0_24 = arith.constant 0 : index
    %34 = vector.load %arg13[%c0_23, %c0_24] : memref<8x32xf32, #tpu.memory_space<vmem>>, vector<8x8xf32>
    tpu.vector_store %arg13[%c0_23, %c0_24], %33 {strides = array<i32>} : memref<8x32xf32, #tpu.memory_space<vmem>>, vector<8x8xf32>,
    %35 = vector.extract_strided_slice %9 {offsets = [0, 8], sizes = [8, 8], strides = [1, 1]} : vector<8x32xf32> to vector<8x8xf32>
    %36 = vector.extract_strided_slice %13 {offsets = [0, 8], sizes = [8, 8], strides = [1, 1]} : vector<8x32xf32> to vector<8x8xf32>
    %37 = vector.extract_strided_slice %17 {offsets = [0, 8], sizes = [8, 8], strides = [1, 1]} : vector<8x32xf32> to vector<8x8xf32>
    %cst_25 = arith.constant dense<0.000000e+00> : vector<8x8xf32>
    %38 = tpu.matmul %35, %36, %cst_25 {dimension_numbers = #tpu.dot_dimension_numbers<[1], [1], [0], [0], [0, 0, 1, 0], [], []>} : vector<8x8xf32>, vector<8x8xf32>, vector<8x8xf32> -> vector<8x8xf32>
    %cst_26 = arith.constant 0.353553385 : f32
    %39 = vector.broadcast %cst_26 : f32 to vector<8x8xf32>
    %40 = arith.mulf %38, %39 : vector<8x8xf32>
    %cst_27 = arith.constant dense<0xFF800000> : vector<8xf32>
    %41 = vector.multi_reduction <maximumf>, %40, %cst_27 [1] : vector<8x8xf32> to vector<8xf32>
    %42 = vector.shape_cast %41 : vector<8xf32> to vector<8x1xf32>
    %43 = vector.broadcast %42 : vector<8x1xf32> to vector<8x8xf32>
    %44 = arith.subf %40, %43 : vector<8x8xf32>
    %45 = math.exp %44 : vector<8x8xf32>
    %cst_28 = arith.constant dense<0.000000e+00> : vector<8xf32>
    %46 = vector.multi_reduction <add>, %45, %cst_28 [1] : vector<8x8xf32> to vector<8xf32>
    %47 = vector.shape_cast %46 : vector<8xf32> to vector<8x1xf32>
    %48 = vector.broadcast %47 : vector<8x1xf32> to vector<8x8xf32>
    %49 = arith.divf %45, %48 : vector<8x8xf32>
    %cst_29 = arith.constant dense<0.000000e+00> : vector<8x8xf32>
    %50 = tpu.matmul %49, %37, %cst_29 {dimension_numbers = #tpu.dot_dimension_numbers<[1], [0], [0], [1], [0, 0, 1, 1], [], []>} : vector<8x8xf32>, vector<8x8xf32>, vector<8x8xf32> -> vector<8x8xf32>
    %c0_30 = arith.constant 0 : index
    %c8 = arith.constant 8 : index
    %51 = vector.load %arg13[%c0_30, %c8] : memref<8x32xf32, #tpu.memory_space<vmem>>, vector<8x8xf32>
    tpu.vector_store %arg13[%c0_30, %c8], %50 {strides = array<i32>} : memref<8x32xf32, #tpu.memory_space<vmem>>, vector<8x8xf32>,
    %52 = vector.extract_strided_slice %9 {offsets = [0, 16], sizes = [8, 8], strides = [1, 1]} : vector<8x32xf32> to vector<8x8xf32>
    %53 = vector.extract_strided_slice %13 {offsets = [0, 16], sizes = [8, 8], strides = [1, 1]} : vector<8x32xf32> to vector<8x8xf32>
    %54 = vector.extract_strided_slice %17 {offsets = [0, 16], sizes = [8, 8], strides = [1, 1]} : vector<8x32xf32> to vector<8x8xf32>
    %cst_31 = arith.constant dense<0.000000e+00> : vector<8x8xf32>
    %55 = tpu.matmul %52, %53, %cst_31 {dimension_numbers = #tpu.dot_dimension_numbers<[1], [1], [0], [0], [0, 0, 1, 0], [], []>} : vector<8x8xf32>, vector<8x8xf32>, vector<8x8xf32> -> vector<8x8xf32>
    %cst_32 = arith.constant 0.353553385 : f32
    %56 = vector.broadcast %cst_32 : f32 to vector<8x8xf32>
    %57 = arith.mulf %55, %56 : vector<8x8xf32>
    %cst_33 = arith.constant dense<0xFF800000> : vector<8xf32>
    %58 = vector.multi_reduction <maximumf>, %57, %cst_33 [1] : vector<8x8xf32> to vector<8xf32>
    %59 = vector.shape_cast %58 : vector<8xf32> to vector<8x1xf32>
    %60 = vector.broadcast %59 : vector<8x1xf32> to vector<8x8xf32>
    %61 = arith.subf %57, %60 : vector<8x8xf32>
    %62 = math.exp %61 : vector<8x8xf32>
    %cst_34 = arith.constant dense<0.000000e+00> : vector<8xf32>
    %63 = vector.multi_reduction <add>, %62, %cst_34 [1] : vector<8x8xf32> to vector<8xf32>
    %64 = vector.shape_cast %63 : vector<8xf32> to vector<8x1xf32>
    %65 = vector.broadcast %64 : vector<8x1xf32> to vector<8x8xf32>
    %66 = arith.divf %62, %65 : vector<8x8xf32>
    %cst_35 = arith.constant dense<0.000000e+00> : vector<8x8xf32>
    %67 = tpu.matmul %66, %54, %cst_35 {dimension_numbers = #tpu.dot_dimension_numbers<[1], [0], [0], [1], [0, 0, 1, 1], [], []>} : vector<8x8xf32>, vector<8x8xf32>, vector<8x8xf32> -> vector<8x8xf32>
    %c0_36 = arith.constant 0 : index
    %c16 = arith.constant 16 : index
    %68 = vector.load %arg13[%c0_36, %c16] : memref<8x32xf32, #tpu.memory_space<vmem>>, vector<8x8xf32>
    tpu.vector_store %arg13[%c0_36, %c16], %67 {strides = array<i32>} : memref<8x32xf32, #tpu.memory_space<vmem>>, vector<8x8xf32>,
    %69 = vector.extract_strided_slice %9 {offsets = [0, 24], sizes = [8, 8], strides = [1, 1]} : vector<8x32xf32> to vector<8x8xf32>
    %70 = vector.extract_strided_slice %13 {offsets = [0, 24], sizes = [8, 8], strides = [1, 1]} : vector<8x32xf32> to vector<8x8xf32>
    %71 = vector.extract_strided_slice %17 {offsets = [0, 24], sizes = [8, 8], strides = [1, 1]} : vector<8x32xf32> to vector<8x8xf32>
    %cst_37 = arith.constant dense<0.000000e+00> : vector<8x8xf32>
    %72 = tpu.matmul %69, %70, %cst_37 {dimension_numbers = #tpu.dot_dimension_numbers<[1], [1], [0], [0], [0, 0, 1, 0], [], []>} : vector<8x8xf32>, vector<8x8xf32>, vector<8x8xf32> -> vector<8x8xf32>
    %cst_38 = arith.constant 0.353553385 : f32
    %73 = vector.broadcast %cst_38 : f32 to vector<8x8xf32>
    %74 = arith.mulf %72, %73 : vector<8x8xf32>
    %cst_39 = arith.constant dense<0xFF800000> : vector<8xf32>
    %75 = vector.multi_reduction <maximumf>, %74, %cst_39 [1] : vector<8x8xf32> to vector<8xf32>
    %76 = vector.shape_cast %75 : vector<8xf32> to vector<8x1xf32>
    %77 = vector.broadcast %76 : vector<8x1xf32> to vector<8x8xf32>
    %78 = arith.subf %74, %77 : vector<8x8xf32>
    %79 = math.exp %78 : vector<8x8xf32>
    %cst_40 = arith.constant dense<0.000000e+00> : vector<8xf32>
    %80 = vector.multi_reduction <add>, %79, %cst_40 [1] : vector<8x8xf32> to vector<8xf32>
    %81 = vector.shape_cast %80 : vector<8xf32> to vector<8x1xf32>
    %82 = vector.broadcast %81 : vector<8x1xf32> to vector<8x8xf32>
    %83 = arith.divf %79, %82 : vector<8x8xf32>
    %cst_41 = arith.constant dense<0.000000e+00> : vector<8x8xf32>
    %84 = tpu.matmul %83, %71, %cst_41 {dimension_numbers = #tpu.dot_dimension_numbers<[1], [0], [0], [1], [0, 0, 1, 1], [], []>} : vector<8x8xf32>, vector<8x8xf32>, vector<8x8xf32> -> vector<8x8xf32>
    %c0_42 = arith.constant 0 : index
    %c24 = arith.constant 24 : index
    %85 = vector.load %arg13[%c0_42, %c24] : memref<8x32xf32, #tpu.memory_space<vmem>>, vector<8x8xf32>
    tpu.vector_store %arg13[%c0_42, %c24], %84 {strides = array<i32>} : memref<8x32xf32, #tpu.memory_space<vmem>>, vector<8x8xf32>,
    %c0_43 = arith.constant 0 : index
    %c0_44 = arith.constant 0 : index
    %86 = vector.load %arg13[%c0_43, %c0_44] : memref<8x32xf32, #tpu.memory_space<vmem>>, vector<8x32xf32>
    %cst_45 = arith.constant dense<0.000000e+00> : vector<8x32xf32>
    %87 = tpu.matmul %86, %5, %cst_45 {dimension_numbers = #tpu.dot_dimension_numbers<[1], [0], [0], [1], [0, 0, 1, 1], [], []>} : vector<8x32xf32>, vector<32x32xf32>, vector<8x32xf32> -> vector<8x32xf32>
    %c0_46 = arith.constant 0 : index
    %c0_47 = arith.constant 0 : index
    %88 = vector.load %arg9[%c0_46, %c0_47] : memref<1x32xf32, #tpu.memory_space<vmem>>, vector<1x32xf32>
    %89 = vector.broadcast %88 : vector<1x32xf32> to vector<8x32xf32>
    %90 = arith.addf %87, %89 : vector<8x32xf32>
    %91 = arith.addf %1, %90 : vector<8x32xf32>
    %c0_48 = arith.constant 0 : index
    %c0_49 = arith.constant 0 : index
    %92 = vector.load %arg10[%c0_48, %c0_49] : memref<1x32xf32, #tpu.memory_space<vmem>>, vector<1x32xf32>
    %c0_50 = arith.constant 0 : index
    %c0_51 = arith.constant 0 : index
    %93 = vector.load %arg11[%c0_50, %c0_51] : memref<1x32xf32, #tpu.memory_space<vmem>>, vector<1x32xf32>
    %cst_52 = arith.constant dense<0.000000e+00> : vector<8xf32>
    %94 = vector.multi_reduction <add>, %91, %cst_52 [1] : vector<8x32xf32> to vector<8xf32>
    %95 = vector.shape_cast %94 : vector<8xf32> to vector<8x1xf32>
    %cst_53 = arith.constant 3.200000e+01 : f32
    %96 = vector.broadcast %cst_53 : f32 to vector<8x1xf32>
    %97 = arith.divf %95, %96 : vector<8x1xf32>
    %98 = vector.broadcast %97 : vector<8x1xf32> to vector<8x32xf32>
    %99 = arith.subf %91, %98 : vector<8x32xf32>
    %100 = arith.mulf %99, %99 : vector<8x32xf32>
    %cst_54 = arith.constant dense<0.000000e+00> : vector<8xf32>
    %101 = vector.multi_reduction <add>, %100, %cst_54 [1] : vector<8x32xf32> to vector<8xf32>
    %102 = vector.shape_cast %101 : vector<8xf32> to vector<8x1xf32>
    %cst_55 = arith.constant 3.200000e+01 : f32
    %103 = vector.broadcast %cst_55 : f32 to vector<8x1xf32>
    %104 = arith.divf %102, %103 : vector<8x1xf32>
    %cst_56 = arith.constant 9.99999997E-7 : f32
    %105 = vector.broadcast %cst_56 : f32 to vector<8x1xf32>
    %106 = arith.addf %104, %105 : vector<8x1xf32>
    %107 = math.rsqrt %106 : vector<8x1xf32>
    %108 = vector.broadcast %107 : vector<8x1xf32> to vector<8x32xf32>
    %109 = arith.mulf %99, %108 : vector<8x32xf32>
    %110 = vector.broadcast %92 : vector<1x32xf32> to vector<8x32xf32>
    %111 = arith.mulf %109, %110 : vector<8x32xf32>
    %112 = vector.broadcast %93 : vector<1x32xf32> to vector<8x32xf32>
    %113 = arith.addf %111, %112 : vector<8x32xf32>
    %c0_57 = arith.constant 0 : index
    %c0_58 = arith.constant 0 : index
    %c0_59 = arith.constant 0 : index
    %114 = vector.load %arg12[%c0_57, %c0_58, %c0_59] : memref<1x8x32xf32, #tpu.memory_space<vmem>>, vector<1x8x32xf32>
    %115 = vector.shape_cast %114 : vector<1x8x32xf32> to vector<8x32xf32>
    %116 = vector.shape_cast %113 : vector<8x32xf32> to vector<1x8x32xf32>
    tpu.vector_store %arg12[%c0_57, %c0_58, %c0_59], %116 {strides = array<i32>} : memref<1x8x32xf32, #tpu.memory_space<vmem>>, vector<1x8x32xf32>,
    return
  }
  func.func @transform_0(%arg0: i32) -> (i32, i32, i32) {
    %c0_i32 = arith.constant 0 : i32
    %c0_i32_0 = arith.constant 0 : i32
    %c0_i32_1 = arith.constant 0 : i32
    return %arg0, %c0_i32, %c0_i32_0 : i32, i32, i32
  }
  func.func @transform_1(%arg0: i32) -> (i32, i32) {
    %c0_i32 = arith.constant 0 : i32
    %c0_i32_0 = arith.constant 0 : i32
    %c0_i32_1 = arith.constant 0 : i32
    return %c0_i32, %c0_i32_0 : i32, i32
  }
  func.func @transform_2(%arg0: i32) -> (i32, i32) {
    %c0_i32 = arith.constant 0 : i32
    %c0_i32_0 = arith.constant 0 : i32
    %c0_i32_1 = arith.constant 0 : i32
    return %c0_i32, %c0_i32_0 : i32, i32
  }
  func.func @transform_3(%arg0: i32) -> (i32, i32) {
    %c0_i32 = arith.constant 0 : i32
    %c0_i32_0 = arith.constant 0 : i32
    %c0_i32_1 = arith.constant 0 : i32
    return %c0_i32, %c0_i32_0 : i32, i32
  }
  func.func @transform_4(%arg0: i32) -> (i32, i32) {
    %c0_i32 = arith.constant 0 : i32
    %c0_i32_0 = arith.constant 0 : i32
    %c0_i32_1 = arith.constant 0 : i32
    return %c0_i32, %c0_i32_0 : i32, i32
  }
  func.func @transform_5(%arg0: i32) -> (i32, i32) {
    %c0_i32 = arith.constant 0 : i32
    %c0_i32_0 = arith.constant 0 : i32
    %c0_i32_1 = arith.constant 0 : i32
    return %c0_i32, %c0_i32_0 : i32, i32
  }
  func.func @transform_6(%arg0: i32) -> (i32, i32) {
    %c0_i32 = arith.constant 0 : i32
    %c0_i32_0 = arith.constant 0 : i32
    %c0_i32_1 = arith.constant 0 : i32
    return %c0_i32, %c0_i32_0 : i32, i32
  }
  func.func @transform_7(%arg0: i32) -> (i32, i32) {
    %c0_i32 = arith.constant 0 : i32
    %c0_i32_0 = arith.constant 0 : i32
    %c0_i32_1 = arith.constant 0 : i32
    return %c0_i32, %c0_i32_0 : i32, i32
  }
  func.func @transform_8(%arg0: i32) -> (i32, i32) {
    %c0_i32 = arith.constant 0 : i32
    %c0_i32_0 = arith.constant 0 : i32
    %c0_i32_1 = arith.constant 0 : i32
    return %c0_i32, %c0_i32_0 : i32, i32
  }
  func.func @transform_9(%arg0: i32) -> (i32, i32) {
    %c0_i32 = arith.constant 0 : i32
    %c0_i32_0 = arith.constant 0 : i32
    %c0_i32_1 = arith.constant 0 : i32
    return %c0_i32, %c0_i32_0 : i32, i32
  }
  func.func @transform_10(%arg0: i32) -> (i32, i32) {
    %c0_i32 = arith.constant 0 : i32
    %c0_i32_0 = arith.constant 0 : i32
    %c0_i32_1 = arith.constant 0 : i32
    return %c0_i32, %c0_i32_0 : i32, i32
  }
  func.func @transform_11(%arg0: i32) -> (i32, i32, i32) {
    %c0_i32 = arith.constant 0 : i32
    %c0_i32_0 = arith.constant 0 : i32
    %c0_i32_1 = arith.constant 0 : i32
    return %arg0, %c0_i32, %c0_i32_0 : i32, i32, i32
  }
}

</mosaic_0001>

<bundles_post_ra>
// kernel: tpu_custom_call.1
= control target key start
LH: loop header
LB: loop body
LE: loop exit
PB: predicated region body
PF: predicated region fallthrough
CT: control target
= control target key end

     0   :  { %s2630_s0 = inlined_call_operand.hbm [shape: f32[2,8,32], index: 0, kind: input, shape index: {}]   ;;  %s2631_s1 = inlined_call_operand.hbm [shape: f32[32,32], index: 1, kind: input, shape index: {}]   ;;  %s2632_s2 = inlined_call_operand.vmem [shape: f32[1,32], index: 2, kind: input, shape index: {}]   ;;  %s2633_s3 = inlined_call_operand.hbm [shape: f32[32,32], index: 3, kind: input, shape index: {}]   ;;  %s2634_s4 = inlined_call_operand.vmem [shape: f32[1,32], index: 4, kind: input, shape index: {}]   ;;  %s2635_s5 = inlined_call_operand.hbm [shape: f32[32,32], index: 5, kind: input, shape index: {}]   ;;  %s2636_s6 = inlined_call_operand.vmem [shape: f32[1,32], index: 6, kind: input, shape index: {}]   ;;  %s2637_s7 = inlined_call_operand.hbm [shape: f32[32,32], index: 7, kind: input, shape index: {}]   ;;  %s2638_s8 = inlined_call_operand.vmem [shape: f32[1,32], index: 8, kind: input, shape index: {}]   ;;  %s2639_s9 = inlined_call_operand.vmem [shape: f32[1,32], index: 9, kind: input, shape index: {}]   ;;  %s2640_s10 = inlined_call_operand.vmem [shape: f32[1,32], index: 10, kind: input, shape index: {}]   ;;  %s2641_s11 = inlined_call_operand.hbm [shape: f32[2,8,32], index: 11, kind: output, shape index: {}]  }
   0x1   :  { %2646 = sst [smem:[#allocation17_spill]] %s2630_s0 }
   0x2   :  { %2647 = sst [smem:[#allocation18_spill]] %s2631_s1 }
   0x3   :  { %2648 = sst [smem:[#allocation19_spill]] %s2639_s9 }
   0x4   :  { %2649 = sst [smem:[#allocation20_spill]] %s2640_s10 }
   0x5   :  { %2650 = sst [smem:[#allocation21_spill]] %s2641_s11 }
   0x6   :  { %16 = vsyncpa [#allocation4], 0 }
   0x7   :  { %18 = vsyncpa [#allocation4 + $0x1], 0 }
   0x8   :  { %19 = vsyncpa [#allocation7], 0 }
   0x9   :  { %20 = vsyncpa [#allocation10], 0 }
   0xa   :  { %21 = vsyncpa [#allocation5], 0 }
   0xb   :  { %23 = vsyncpa [#allocation5 + $0x1], 0  ;;  %s2224_s17 = smov 0   ;;  %s2226_s18 = smov 0  }
   0xc   :  { %s2228_s19 = smov 0   ;;  %s2230_s20 = smov 0  }
   0xd LB: > { %s2147_s21 = smov [#allocation6]   ;;  %s2245_s23 = sadd.s32 4294967295, %s2145_s20   ;;  %s2145_s20 = sphi %s2230_s20, %s2676_s20   ;;  %s2141_s19 = sphi %s2228_s19, %s2675_s19   ;;  %s2137_s18 = sphi %s2226_s18, %s2674_s18   ;;  %s2133_s17 = sphi %s2224_s17, %s2673_s17  }
   0xe   : > { %s308_s22 = sshll.u32 %s2147_s21, 4  ;;  %p1628_p0 = scmp.ge.s32.totalorder %s2145_s20, 1  ;;  %s2250_s22 = int_to_ptr.vmem [resolvable:$true] %s308_s22 }
   0xf   : > { %p2643_p1 = scmp.eq.s32.totalorder %s2245_s23, 0  ;;  %p296_p2 = scmp.lt.s32.totalorder %s2145_s20, 3 }
  0x10   : > { %s2148_s25 = smov [#allocation9]   ;;  %s2149_s28 = smov [#allocation8]  }
  0x11   : > { %p2252_p3 = pnand %p1628_p0, %p296_p2  ;;  %s340_s26 = sshll.u32 %s2148_s25, 4  ;;  %s2265_s26 = int_to_ptr.vmem [resolvable:$true] %s340_s26 }
  0x12   : > { %s324_s29 = sshll.u32 %s2149_s28, 4  ;;  %s2653_s1 = sld [smem:[#allocation18_spill]]  ;;  %s2267_s29 = int_to_ptr.vmem [resolvable:$true] %s324_s29 }
  0x13   : > { %s2651_s24 = scalar_select %p2252_p3, 1, 0 }
  0x14   : > { %p1833_p5 = pneg %p2252_p3 }
  0x16   : > { %p2261_p6 = pnand %p1833_p5, %p2643_p1 }
  0x18   : > { %s1929_s13 = scalar_lea.hbm %s2653_s1, 512  ;;  %p2277_p8 = pneg %p2261_p6 }
  0x19   : > { %p1930_p7 = scmp.ne.s32.totalorder %s2653_s1, %s1929_s13  ;;  %p1936_p11 = scmp.lt.u32.totalorder %s1929_s13, %s2653_s1 }
  0x1b   : > { %p1932_p9 = pnand %p2277_p8, %p1930_p7 }
  0x1d   : > { %p1933_p10 = pneg %p1932_p9 }
  0x1f   : > { %p1938_p12 = pnand %p1936_p11, %p1933_p10 }
  0x21   : > { %1941 = shalt.err (!%p1938_p12)
}
  0x22   : > { %s1942_s28 = scalar_lea.vmem %s2250_s22, 512  ;;  %p1950_p5 = scmp.lt.s32.totalorder %s2250_s22, %s2250_s22 }
  0x23   : > { %p1943_p13 = scmp.ne.s32.totalorder %s2250_s22, %s1942_s28  ;;  %p1951_p4 = scmp.lt.s32.totalorder %s1942_s28, %s1942_s28 }
  0x25   : > { %p1945_p0 = pnand %p1943_p13, %p2277_p8  ;;  %p1952_p7 = por %p1951_p4, %p1950_p5 }
  0x27   : > { %p1946_p2 = pneg %p1945_p0 }
  0x29   : > { %p1953_p9 = pnand %p1952_p7, %p1946_p2 }
  0x2b   : > { %1956 = shalt.err (!%p1953_p9)
}
  0x2c   : > { %s2150_s30 = smov 128   ;;  %s2151_s12 = smov 8  }
  0x2d   : > { %1836 = dma.hbm_to_vmem [thread:$0]  (!%p2261_p6), %s2653_s1, 512, %s2250_s22, [#allocation7], %s2150_s30, %s2150_s30, %s2151_s12  }
  0x2e   : > { %s1957_s25 = scalar_lea.hbm %s2635_s5, 512 }
  0x2f   : > { %p1958_p4 = scmp.ne.s32.totalorder %s2635_s5, %s1957_s25  ;;  %p1964_p12 = scmp.lt.u32.totalorder %s1957_s25, %s2635_s5 }
  0x31   : > { %p1960_p10 = pnand %p1958_p4, %p2277_p8 }
  0x33   : > { %p1961_p11 = pneg %p1960_p10 }
  0x35   : > { %p1966_p13 = pnand %p1964_p12, %p1961_p11 }
  0x37   : > { %1969 = shalt.err (!%p1966_p13)
}
  0x38   : > { %s1970_s22 = scalar_lea.vmem %s2265_s26, 512  ;;  %p1978_p7 = scmp.lt.s32.totalorder %s2265_s26, %s2265_s26 }
  0x39   : > { %p1971_p0 = scmp.ne.s32.totalorder %s2265_s26, %s1970_s22  ;;  %p1979_p9 = scmp.lt.s32.totalorder %s1970_s22, %s1970_s22 }
  0x3b   : > { %p1973_p2 = pnand %p1971_p0, %p2277_p8  ;;  %p1980_p4 = por %p1979_p9, %p1978_p7 }
  0x3d   : > { %p1974_p5 = pneg %p1973_p2 }
  0x3f   : > { %p1981_p10 = pnand %p1980_p4, %p1974_p5 }
  0x41   : > { %1984 = shalt.err (!%p1981_p10)
}
  0x42   : > { %1842 = dma.hbm_to_vmem [thread:$0]  (!%p2261_p6), %s2635_s5, 512, %s2265_s26, [#allocation10], %s2150_s30, %s2150_s30, %s2151_s12  }
  0x43   : > { %s1985_s14 = scalar_lea.hbm %s2633_s3, 512 }
  0x44   : > { %p1986_p11 = scmp.ne.s32.totalorder %s2633_s3, %s1985_s14  ;;  %p1992_p0 = scmp.lt.u32.totalorder %s1985_s14, %s2633_s3 }
  0x46   : > { %p1988_p12 = pnand %p1986_p11, %p2277_p8 }
  0x48   : > { %p1989_p13 = pneg %p1988_p12 }
  0x4a   : > { %p1994_p2 = pnand %p1992_p0, %p1989_p13 }
  0x4c   : > { %1997 = shalt.err (!%p1994_p2)
}
  0x4d   : > { %s1998_s26 = scalar_lea.vmem %s2267_s29, 512  ;;  %p2006_p4 = scmp.lt.s32.totalorder %s2267_s29, %s2267_s29 }
  0x4e   : > { %p1999_p5 = scmp.ne.s32.totalorder %s2267_s29, %s1998_s26  ;;  %p2007_p10 = scmp.lt.s32.totalorder %s1998_s26, %s1998_s26 }
  0x50   : > { %p2001_p7 = pnand %p1999_p5, %p2277_p8  ;;  %p2008_p11 = por %p2007_p10, %p2006_p4 }
  0x52   : > { %p2002_p9 = pneg %p2001_p7 }
  0x54   : > { %p2009_p12 = pnand %p2008_p11, %p2002_p9 }
  0x56   : > { %2012 = shalt.err (!%p2009_p12)
}
  0x57   : > { %1839 = dma.hbm_to_vmem [thread:$0]  (!%p2261_p6), %s2633_s3, 512, %s2267_s29, [#allocation7], %s2150_s30, %s2150_s30, %s2151_s12  }
  0x58   : > { %s2152_s10 = smov [#allocation11]   ;;  %s2013_s15 = scalar_lea.hbm %s2637_s7, 512 }
  0x59   : > { %s356_s11 = sshll.u32 %s2152_s10, 4  ;;  %p2014_p13 = scmp.ne.s32.totalorder %s2637_s7, %s2013_s15  ;;  %s357_s11 = int_to_ptr.vmem [resolvable:$true] %s356_s11 }
  0x5a   : > { %p2020_p5 = scmp.lt.u32.totalorder %s2013_s15, %s2637_s7 }
  0x5b   : > { %p2016_p0 = pnand %p2014_p13, %p2277_p8 }
  0x5d   : > { %p2017_p2 = pneg %p2016_p0 }
  0x5f   : > { %p2022_p7 = pnand %p2020_p5, %p2017_p2 }
  0x61   : > { %2025 = shalt.err (!%p2022_p7)
}
  0x62   : > { %s2026_s29 = scalar_lea.vmem %s357_s11, 512  ;;  %p2034_p11 = scmp.lt.s32.totalorder %s357_s11, %s357_s11 }
  0x63   : > { %p2027_p9 = scmp.ne.s32.totalorder %s357_s11, %s2026_s29  ;;  %p2035_p12 = scmp.lt.s32.totalorder %s2026_s29, %s2026_s29 }
  0x65   : > { %p2029_p4 = pnand %p2027_p9, %p2277_p8  ;;  %p2036_p1 = por %p2035_p12, %p2034_p11 }
  0x67   : > { %p2030_p10 = pneg %p2029_p4 }
  0x69   : > { %p2037_p3 = pnand %p2036_p1, %p2030_p10 }
  0x6b   : > { %2040 = shalt.err (!%p2037_p3)
}
  0x6c   : > { %1845 = dma.hbm_to_vmem [thread:$0]  (!%p2261_p6), %s2637_s7, 512, %s357_s11, [#allocation10], %s2150_s30, %s2150_s30, %s2151_s12  }
  0x6d   : > { %s1627_s27 = sadd.s32 4294967294, %s2145_s20   ;;  %s2376_s16 = sadd.s32 1, %s2145_s20  }
  0x6e   : > { %s33_s10 = ssub.s32 %s2145_s20, %s2376_s16  ;;  %s36_s13 = sadd.s32 1, %s2141_s19 }
  0x6f   : > { %p34_p1 = scmp.eq.s32.totalorder %s33_s10, 0  ;;  %p43_p3 = scmp.ne.s32.totalorder %s2141_s19, %s2137_s18 }
  0x70   : > { %p44_p8 = scmp.eq.s32.totalorder %s2145_s20, 0  ;;  %p49_p13 = scmp.ne.s32.totalorder %s2137_s18, %s2133_s17 }
  0x71   : > { %s2387_s14 = scalar_select %p34_p1, %s2141_s19, %s36_s13  }
  0x72   : > { %p2389_p0 = por %p44_p8, %p43_p3  ;;  %p2656_p2 = scmp.eq.s32.totalorder %s2245_s23, 0 }
  0x73   : > { %p283_p5 = scmp.eq.s32.totalorder %s2245_s23, 1  ;;  %p289_p7 = scmp.eq.s32.totalorder %s1627_s27, 1 }
  0x74   : > { %p2395_p6 = por %p2656_p2, %p49_p13  ;;  %p1858_p9 = scmp.lt.s32.totalorder %s2145_s20, 2 }
  0x75   : > { %s379_s12 = sand.u32 1, %s2141_s19   ;;  %p2402_p4 = por %p283_p5, %p43_p3 }
  0x76   : > { %p2406_p10 = por %p289_p7, %p49_p13  ;;  %s1634_s25 = sshll.u32 %s379_s12, 3 }
  0x77   : > { %s2658_s11 = scalar_select %p2402_p4, 1, 0 }
  0x78   : > { %s2659_s21 = scalar_select %p2406_p10, 1, 0 }
  0x79   : > { %s1635_s28 = sshll.u32 %s2145_s20, 7  ;;  %s2660_s0 = sld [smem:[#allocation17_spill]] }
  0x7a   : > { %s383_s9 = scalar_lea.vmem [#allocation3], %s1634_s25  ;;  %p2420_p11 = pnand %p1858_p9, %p2389_p0 }
  0x7b   : > { %s390_s27 = sshll.u32 %s383_s9, 4  ;;  %s380_s13 = scalar_lea.sflag [#allocation4], %s379_s12  ;;  %s2416_s27 = int_to_ptr.vmem [resolvable:$true] %s390_s27 }
  0x7c   : > { %p2043_p1 = pneg %p2420_p11 }
  0x7f   : > { %s2414_s22 = scalar_lea.hbm %s2660_s0, %s1635_s28  ;;  %s2046_s26 = scalar_lea.hbm %s2660_s0, 256 }
  0x80   : > { %s2041_s1 = scalar_lea.hbm %s2414_s22, 128  ;;  %p2047_p13 = scmp.lt.u32.totalorder %s2414_s22, %s2660_s0 }
  0x81   : > { %p2042_p12 = scmp.ne.s32.totalorder %s2414_s22, %s2041_s1  ;;  %p2048_p0 = scmp.lt.u32.totalorder %s2046_s26, %s2041_s1 }
  0x82   : > { %p2050_p5 = scmp.lt.u32.totalorder %s2041_s1, %s2414_s22 }
  0x83   : > { %p2044_p3 = pnand %p2043_p1, %p2042_p12  ;;  %p2049_p2 = por %p2048_p0, %p2047_p13 }
  0x85   : > { %p2045_p8 = pneg %p2044_p3  ;;  %p2051_p7 = por %p2050_p5, %p2049_p2 }
  0x87   : > { %p2052_p9 = pnand %p2051_p7, %p2045_p8 }
  0x89   : > { %2055 = shalt.err (!%p2052_p9)
}
  0x8a   : > { %s2056_s12 = scalar_lea.vmem %s2416_s27, 128  ;;  %s2153_s9 = smov [#allocation3]  }
  0x8b   : > { %p2057_p12 = scmp.ne.s32.totalorder %s2416_s27, %s2056_s12  ;;  %s2061_s25 = sshll.u32 %s2153_s9, 4  ;;  %s2062_s25 = int_to_ptr.vmem [resolvable:$false] %s2061_s25 }
  0x8c   : > { %s2063_s28 = scalar_lea.vmem %s2062_s25, 256  ;;  %p2064_p4 = scmp.lt.s32.totalorder %s2416_s27, %s2062_s25 }
  0x8d   : > { %p2059_p3 = pnand %p2057_p12, %p2043_p1  ;;  %p2065_p13 = scmp.lt.s32.totalorder %s2063_s28, %s2056_s12 }
  0x8f   : > { %p2060_p10 = pneg %p2059_p3  ;;  %p2066_p0 = por %p2065_p13, %p2064_p4 }
  0x91   : > { %p2067_p2 = pnand %p2066_p0, %p2060_p10 }
  0x93   : > { %2070 = shalt.err (!%p2067_p2)
}
  0x94   : > { %1849 = dma.hbm_to_vmem [thread:$0]  (!%p2420_p11), %s2414_s22, 128, %s2416_s27, %s380_s13  }
  0x95   : > { %p2662_p8 = scmp.ne.s32.totalorder %s2651_s24, 0 }
  0x96   : > { %s2452_s1 = sand.u32 (!%p2662_p8), 1, %s2137_s18  }
  0x97   : > { %399 = sbr.rel (%p2662_p8) target bundleno = 2395 (0x95b), region = 64  ;;  %s1637_s26 = sshll.u32 (!%p2662_p8), %s2452_s1, 3 }
  0x98   : > { %s402_s15 = scalar_lea.sflag (!%p2662_p8), [#allocation4], %s2452_s1  ;;  %s2458_s29 = scalar_lea.vmem (!%p2662_p8), [#allocation3], %s1637_s26 }
  0x9e   : > { %2116 = dma.done.wait (%p2395_p6), %s402_s15, 128  }
  0x9f   : > { %2118 = vsyncadd (%p2395_p6), %s402_s15, 4294967168  ;;  %p2663_p4 = scmp.eq.s32.totalorder %s2245_s23, 0 }
  0xa1   : > { %2120 = dma.done.wait (%p2663_p4), [#allocation7], 1024   ;;  %p2664_p10 = pmov %p2663_p4 }
  0xa2   : > { %p2665_p11 = pmov %p2663_p4 }
  0xa3   : > { %2122 = vsyncadd (%p2664_p10), [#allocation7], 4294966272 }
  0xa4   : > { %2124 = dma.done.wait (%p2665_p11), [#allocation10], 1024   ;;  %p2666_p1 = pmov %p2663_p4 }
  0xa5   : > { %v2154_v0 = vmov 0.0|0.0   ;;  %vm2155_vm0 = vmmov 0   ;;  %v2156_v1 = vmov 0.0   ;;  %v465_v2 = vld [vmem:[#allocation8] sm:$0xff]  ;;  %v466_v3 = vld [vmem:[#allocation8 + $0x8] sm:$0xff]  ;;  %v467_v7 = vld [vmem:[#allocation8 + $0x10] sm:$0xff] }
  0xa6   : > { %2126 = vsyncadd (%p2666_p1), [#allocation10], 4294966272  ;;  %1795 = vmatprep.subr.bf16.mxu1 %v2154_v0  ;;  %1789 = vmatprep.subr.bf16.mxu0 %v2154_v0  ;;  %v461_v4 = vld [vmem:[#allocation6] sm:$0xff]  ;;  %v1796_v5 = vpack.c.bf16 %v466_v3, %v465_v2  ;;  %v462_v6 = vld [vmem:[#allocation6 + $0x8] sm:$0xff]  ;;  %vm484_vm1 = vcmask 261120   ;;  %vm712_vm2 = vcmask 64512  }
  0xa7   : > { %1724 = vmatprep.mubr.msk.f32.mxu1 %vm2155_vm0, %v2156_v1  ;;  %1713 = vmatprep.mubr.msk.f32.mxu0 %vm2155_vm0, %v2156_v1  ;;  %v468_v8 = vld [vmem:[#allocation8 + $0x18] sm:$0xff]  ;;  %v1790_v9 = vpack.c.bf16 %v462_v6, %v461_v4  ;;  %v463_v10 = vld [vmem:[#allocation6 + $0x10] sm:$0xff]  ;;  %v1645_v15 = vld [vmem:[%s2634_s4] ss:$0 sm:$0xff]  ;;  %s2157_s10 = smov 120   ;;  %s2158_s13 = smov 112  }
  0xa8   : > { %v464_v11 = vld [vmem:[#allocation6 + $0x18] sm:$0xff]  ;;  %1797 = vmatpush3.bf16.msra.mxu1 %v1796_v5  ;;  %v1799_v12 = vpack.c.bf16 %v468_v8, %v467_v7  ;;  %v1643_v16 = vld [vmem:[%s2632_s2] ss:$0 sm:$0xff]  ;;  %s2159_s12 = smov 104   ;;  %v469_v23 = vld [vmem:[#allocation9] sm:$0xff]  ;;  %s2160_s28 = smov 8  }
  0xa9   : > { %1791 = vmatpush3.bf16.msra.mxu0 %v1790_v9  ;;  %1798 = vmatprep.subr.bf16.mxu1 %v2154_v0  ;;  %v1793_v13 = vpack.c.bf16 %v464_v11, %v463_v10  ;;  %v2481_v14 = vld [vmem:[%s2458_s29] sm:$0xff]  ;;  %v470_v24 = vld [vmem:[#allocation9 + $0x8] sm:$0xff]  ;;  %s2161_s15 = smov 16   ;;  %s2162_s29 = smov 24   ;;  %vm1046_vm3 = vcmask 130112   ;;  %vm1218_vm4 = vcmask 195712  }
  0xaa   : > { %1792 = vmatprep.subr.bf16.mxu0 %v2154_v0  ;;  %v471_v25 = vld [vmem:[#allocation9 + $0x10] sm:$0xff]  ;;  %v1802_v26 = vpack.c.bf16 %v470_v24, %v469_v23  ;;  %v472_v27 = vld [vmem:[#allocation9 + $0x18] sm:$0xff]  ;;  %v1647_v38 = vld [vmem:[%s2636_s6] ss:$0 sm:$0xff]  ;;  %vm1390_vm5 = vcmask 261312   ;;  %s2668_s9 = sld [smem:[#allocation20_spill]] }
  0xab   : > { %v1805_v28 = vpack.c.bf16 %v472_v27, %v471_v25  ;;  %s1666_s25 = sshll.u32 %s2245_s23, 7  ;;  %s2669_s30 = sld [smem:[#allocation21_spill]] }
  0xac   : > { %1800 = vmatpush3.bf16.msra.mxu1 %v1799_v12  ;;  %s1506_s22 = scalar_lea.sflag [#allocation5], %s2452_s1  ;;  %p2670_p5 = scmp.ne.s32.totalorder %s2658_s11, 0 }
  0xad   : > { %1794 = vmatpush3.bf16.msra.mxu0 %v1793_v13  ;;  %1738 = vmatprep.subr.mxu1 %v2156_v1  ;;  %s2163_s23 = smov [#allocation12]  }
  0xae   : > { %1801 = vmatprep.subr.bf16.mxu0 %v2154_v0 }
  0xaf   : > { %1725 = vmatmul.mubr.msk.f32.vlgmr.msra.gmra.mrb[0].mxu1 %vm484_vm1, %v2481_v14 }
  0xb0   : > { %1714 = vmatmul.mubr.msk.f32.vlgmr.msra.gmra.mrb[0].mxu0 %vm484_vm1, %v2481_v14  ;;  %1740 = vmatprep.mubr.msk.f32.mxu1 %vm2155_vm0, %v2156_v1 }
  0xb1   : > { %1735 = vmatprep.mubr.msk.f32.mxu0 %vm2155_vm0, %v2156_v1  ;;  %1803 = vmatpush3.bf16.msra.mxu0 %v1802_v26  ;;  %s2585_s0 = scalar_lea.hbm %s2669_s30, %s1666_s25 }
  0xb2   : > { %1804 = vmatprep.subr.bf16.mxu0 %v2154_v0 }
  0xb5   : > { %1806 = vmatpush3.bf16.msra.mxu0 %v1805_v28 }
  0xb6   : > { %1758 = vmatprep.subr.mxu0 %v2156_v1 }
  0xb8   : > { %1736 = vmatmul.mubr.msk.f32.vlgmr.msra.gmra.mrb[2].mxu0 %vm484_vm1, %v2481_v14 }
  0xb9   : > { %1760 = vmatprep.mubr.msk.f32.mxu0 %vm2155_vm0, %v2156_v1 }
 0x182   : > { %v631_v17 = vpop.f32.mrb[0].mxu1 }
 0x183   : > { %v632_v18 = vadd.f32 %v1645_v15, %v631_v17  ;;  %v1726_v19 = vpop.f32.mrb[1].mxu1  ;;  %v554_v20 = vpop.f32.mrb[0].mxu0 }
 0x184   : > { %v555_v21 = vadd.f32 %v1643_v16, %v554_v20  ;;  %v1715_v22 = vpop.f32.mrb[1].mxu0 }
 0x185   : > { %877 = vrot.lane.b32.xlu1 %v632_v18, %s2157_s10  ;;  %1739 = vmatpush3.xpose.msk.msra.mxu1 %vm712_vm2, %v632_v18 }
 0x186   : > { %1743 = vmatprep.subr.mxu1 %v2156_v1 }
 0x188   : > { %1741 = vmatmul.mubr.msk.f32.vlgmr.msra.gmra.mrb[2].mxu1 %vm712_vm2, %v555_v21 }
 0x189   : > { %875 = vrot.lane.b32.xlu1 %v555_v21, %s2157_s10  ;;  %1745 = vmatprep.mubr.msk.f32.mxu1 %vm2155_vm0, %v2156_v1 }
 0x18b   : > { %v708_v39 = vpop.f32.mrb[2].mxu0 }
 0x18c   : > { %v2520_v40 = vadd.f32 %v1647_v38, %v708_v39  ;;  %v1737_v41 = vpop.f32.mrb[3].mxu0 }
 0x18d   : > { %1048 = vrot.lane.b32.xlu1 %v555_v21, %s2158_s13 }
 0x18e   : > { %1744 = vmatpush3.msra.mxu1 %v2520_v40 }
 0x18f   : > { %1748 = vmatprep.subr.mxu1 %v2156_v1 }
 0x191   : > { %1222 = vrot.lane.b32.xlu1 %v632_v18, %s2159_s12 }
 0x195   : > { %1220 = vrot.lane.b32.xlu1 %v555_v21, %s2159_s12 }
 0x1f7   : > { %v878_v42 = vpop.permute.xlu1 %877 }
 0x1fb   : > { %v876_v43 = vpop.permute.xlu1 %875 }
 0x1ff   : > { %v1049_v44 = vpop.permute.xlu1 %1048 }
 0x203   : > { %v1223_v47 = vpop.permute.xlu1 %1222 }
 0x207   : > { %v1221_v49 = vpop.permute.xlu1 %1220 }
 0x25b   : > { %v785_v29 = vpop.f32.mrb[2].mxu1 }
 0x25c   : > { %v789_v30 = vmul.f32 0.35355338, %v785_v29  ;;  %v1742_v31 = vpop.f32.mrb[3].mxu1 }
 0x25d   : > { %v473_v31 = vld [vmem:[#allocation11] sm:$0xff] }
 0x25e   : > { %v790_v32 = vsel %vm712_vm2, %v789_v30, -inf }
 0x25f   : > { %791 = vmax.xlane.f32.xlu0 %v790_v32  ;;  %v474_v32 = vld [vmem:[#allocation11 + $0x8] sm:$0xff] }
 0x2ec   : > { %v792_v33 = vpop.xlane.xlu0 %791 }
 0x2ed   : > { %v793_v34 = vsub.f32 %v789_v30, %v792_v33  ;;  %v1808_v33 = vpack.c.bf16 %v474_v32, %v473_v31 }
 0x2ef   : > { %v794_v35 = vmul.f32 1.442695, %v793_v34  ;;  %v475_v34 = vld [vmem:[#allocation11 + $0x10] sm:$0xff] }
 0x2f1   : > { %1911 = vpow2.f32 %v794_v35  ;;  %v476_v35 = vld [vmem:[#allocation11 + $0x18] sm:$0xff] }
 0x2fb   : > { %v1912_v36 = vpop.eup %1911 }
 0x2fc   : > { %v796_v37 = vsel %vm712_vm2, %v1912_v36, 0.0 }
 0x2fd   : > { %797 = vadd.xlane.f32.xlu0 %v796_v37 }
 0x313   : > { %1050 = vrot.lane.b32.xlu0 %v632_v18, %s2158_s13 }
 0x38a   : > { %v798_v45 = vpop.xlane.xlu0 %797 }
 0x38b   : > { %1913 = vrcp.f32 %v798_v45  ;;  %v1661_v45 = vld [vmem:[%s2638_s8] ss:$0 sm:$0xff] }
 0x38e   : > { %v1051_v46 = vpop.permute.xlu0 %1050 }
 0x38f   : > { %1759 = vmatpush3.xpose.msk.msra.mxu0 %vm712_vm2, %v1051_v46 }
 0x390   : > { %1768 = vmatprep.subr.mxu0 %v2156_v1 }
 0x392   : > { %1761 = vmatmul.mubr.msk.f32.vlgmr.msra.gmra.mrb[4].mxu0 %vm712_vm2, %v1049_v44 }
 0x393   : > { %1769 = vmatpush3.xpose.msk.msra.mxu0 %vm712_vm2, %v1223_v47  ;;  %1770 = vmatprep.mubr.msk.f32.mxu0 %vm2155_vm0, %v2156_v1 }
 0x394   : > { %1807 = vmatprep.subr.bf16.mxu0 %v2154_v0 }
 0x395   : > { %v1914_v48 = vpop.eup %1913 }
 0x396   : > { %v800_v50 = vmul.f32 %v1914_v48, %v1912_v36  ;;  %1771 = vmatmul.mubr.msk.f32.vlgmr.msra.gmra.mrb[6].mxu0 %vm712_vm2, %v1221_v49  ;;  %v1811_v36 = vpack.c.bf16 %v476_v35, %v475_v34 }
 0x397   : > { %1786 = vmatprep.mubr.msk.f32.mxu0 %vm2155_vm0, %v2156_v1  ;;  %1809 = vmatpush3.bf16.msra.mxu0 %v1808_v33 }
 0x398   : > { %1746 = vmatmul.mubr.msk.f32.vlgmr.msra.gmra.mrb[4].mxu1 %vm712_vm2, %v800_v50  ;;  %1810 = vmatprep.subr.bf16.mxu0 %v2154_v0 }
 0x399   : > { %1749 = vmatpush3.xpose.msk.msra.mxu1 %vm712_vm2, %v878_v42  ;;  %1750 = vmatprep.mubr.msk.f32.mxu1 %vm2155_vm0, %v2156_v1 }
 0x39a   : > { %1753 = vmatprep.subr.mxu1 %v2156_v1 }
 0x39b   : > { %1812 = vmatpush3.bf16.msra.mxu0 %v1811_v36 }
 0x39c   : > { %1751 = vmatmul.mubr.msk.f32.vlgmr.msra.gmra.mrb[6].mxu1 %vm712_vm2, %v876_v43 }
 0x39d   : > { %1755 = vmatprep.mubr.msk.f32.mxu1 %vm2155_vm0, %v2156_v1 }
 0x465   : > { %v1122_v51 = vpop.f32.mrb[4].mxu0 }
 0x466   : > { %v1126_v52 = vmul.f32 0.35355338, %v1122_v51  ;;  %v1762_v53 = vpop.f32.mrb[5].mxu0 }
 0x468   : > { %v1127_v54 = vsel %vm712_vm2, %v1126_v52, -inf }
 0x469   : > { %1128 = vmax.xlane.f32.xlu0 %v1127_v54  ;;  %v1294_v55 = vpop.f32.mrb[6].mxu0 }
 0x46a   : > { %v1772_v56 = vpop.f32.mrb[7].mxu0  ;;  %v1298_v62 = vmul.f32 0.35355338, %v1294_v55 }
 0x46b   : > { %v870_v57 = vpop.f32.mrb[4].mxu1 }
 0x46c   : > { %874 = vst.msk [vmem:[#allocation2] sm:$0xff] %vm712_vm2, %v870_v57  ;;  %v1747_v58 = vpop.f32.mrb[5].mxu1  ;;  %v1299_v2 = vsel %vm712_vm2, %v1298_v62, -inf }
 0x46f   : > { %v949_v59 = vpop.f32.mrb[6].mxu1 }
 0x470   : > { %v953_v60 = vmul.f32 0.35355338, %v949_v59  ;;  %v1752_v61 = vpop.f32.mrb[7].mxu1 }
 0x471   : > { %v1664_v61 = vld [vmem:[%s2668_s9] ss:$0 sm:$0xff] }
 0x472   : > { %v954_v63 = vsel %vm712_vm2, %v953_v60, -inf }
 0x473   : > { %955 = vmax.xlane.f32.xlu1 %v954_v63 }
 0x477   : > { %1300 = vmax.xlane.f32.xlu1 %v1299_v2 }
 0x4f6   : > { %v1129_v3 = vpop.xlane.xlu0 %1128 }
 0x4f7   : > { %v1130_v4 = vsub.f32 %v1126_v52, %v1129_v3 }
 0x4f9   : > { %v1131_v5 = vmul.f32 1.442695, %v1130_v4 }
 0x4fb   : > { %1915 = vpow2.f32 %v1131_v5 }
 0x500   : > { %v956_v6 = vpop.xlane.xlu1 %955 }
 0x501   : > { %v957_v15 = vsub.f32 %v953_v60, %v956_v6 }
 0x503   : > { %v958_v16 = vmul.f32 1.442695, %v957_v15 }
 0x504   : > { %v1301_v7 = vpop.xlane.xlu1 %1300 }
 0x505   : > { %v1916_v8 = vpop.eup %1915  ;;  %v1302_v9 = vsub.f32 %v1298_v62, %v1301_v7 }
 0x506   : > { %v1133_v10 = vsel %vm712_vm2, %v1916_v8, 0.0 }
 0x507   : > { %v1303_v11 = vmul.f32 1.442695, %v1302_v9  ;;  %1134 = vadd.xlane.f32.xlu0 %v1133_v10 }
 0x509   : > { %1917 = vpow2.f32 %v1303_v11 }
 0x50a   : > { %1919 = vpow2.f32 %v958_v16 }
 0x513   : > { %v1918_v12 = vpop.eup %1917 }
 0x514   : > { %v1305_v13 = vsel %vm712_vm2, %v1918_v12, 0.0  ;;  %v1920_v17 = vpop.eup %1919 }
 0x515   : > { %1306 = vadd.xlane.f32.xlu1 %v1305_v13  ;;  %v960_v18 = vsel %vm712_vm2, %v1920_v17, 0.0 }
 0x51d   : > { %966 = vrot.lane.b32.xlu0 %v2520_v40, %s2157_s10  ;;  %s2667_s10 = sld [smem:[#allocation19_spill]] }
 0x526   : > { %1138 = vrot.lane.b32.xlu1 %v2520_v40, %s2158_s13 }
 0x54a   : > { %961 = vadd.xlane.f32.xlu1 %v960_v18 }
 0x55b   : > { %1310 = vrot.lane.b32.xlu1 %v2520_v40, %s2159_s12 }
 0x594   : > { %v1135_v19 = vpop.xlane.xlu0 %1134 }
 0x598   : > { %v967_v20 = vpop.permute.xlu0 %966 }
 0x599   : > { %1754 = vmatpush3.msra.mxu1 %v967_v20 }
 0x59a   : > { %1763 = vmatprep.subr.mxu1 %v2156_v1 }
 0x5a2   : > { %v1307_v21 = vpop.xlane.xlu1 %1306 }
 0x5a6   : > { %v1139_v22 = vpop.permute.xlu1 %1138 }
 0x5d7   : > { %v962_v23 = vpop.xlane.xlu1 %961 }
 0x5d8   : > { %1921 = vrcp.f32 %v962_v23 }
 0x5d9   : > { %1923 = vrcp.f32 %v1135_v19 }
 0x5da   : > { %1925 = vrcp.f32 %v1307_v21 }
 0x5db   : > { %v1311_v29 = vpop.permute.xlu1 %1310 }
 0x5e2   : > { %v1922_v24 = vpop.eup %1921 }
 0x5e3   : > { %v964_v25 = vmul.f32 %v1922_v24, %v1920_v17  ;;  %v1924_v26 = vpop.eup %1923 }
 0x5e4   : > { %v1137_v27 = vmul.f32 %v1924_v26, %v1916_v8  ;;  %v1926_v28 = vpop.eup %1925 }
 0x5e5   : > { %1756 = vmatmul.mubr.msk.f32.vlgmr.msra.gmra.mrb[8].mxu1 %vm712_vm2, %v964_v25  ;;  %v1309_v30 = vmul.f32 %v1926_v28, %v1918_v12 }
 0x5e6   : > { %1764 = vmatpush3.msra.mxu1 %v1139_v22  ;;  %1765 = vmatprep.mubr.msk.f32.mxu1 %vm2155_vm0, %v2156_v1 }
 0x5e7   : > { %1773 = vmatprep.subr.mxu1 %v2156_v1 }
 0x5e9   : > { %1766 = vmatmul.mubr.msk.f32.vlgmr.msra.gmra.mrb[10].mxu1 %vm712_vm2, %v1137_v27 }
 0x5ea   : > { %1774 = vmatpush3.msra.mxu1 %v1311_v29  ;;  %1775 = vmatprep.mubr.msk.f32.mxu1 %vm2155_vm0, %v2156_v1 }
 0x5ed   : > { %1776 = vmatmul.mubr.msk.f32.vlgmr.msra.gmra.mrb[12].mxu1 %vm712_vm2, %v1309_v30 }
 0x6b8   : > { %v1038_v37 = vpop.f32.mrb[8].mxu1 }
 0x6b9   : > { %1043 = vrot.lane.b32.xlu0 %v1038_v37, %s2160_s28  ;;  %v1757_v38 = vpop.f32.mrb[9].mxu1  ;;  %s459_s28 = scalar_lea.vmem [#allocation12], %s1637_s26  ;;  %s2075_s26 = sshll.u32 %s2163_s23, 4  ;;  %s2076_s26 = int_to_ptr.vmem [resolvable:$false] %s2075_s26 }
 0x6bc   : > { %v1210_v39 = vpop.f32.mrb[10].mxu1 }
 0x6bd   : > { %1215 = vrot.lane.b32.xlu1 %v1210_v39, %s2161_s15  ;;  %v1767_v1 = vpop.f32.mrb[11].mxu1  ;;  %s1519_s15 = sshll.u32 %s459_s28, 4  ;;  %s2587_s15 = int_to_ptr.vmem [resolvable:$true] %s1519_s15 }
 0x6be   : > { %s2071_s27 = scalar_lea.vmem %s2587_s15, 128  ;;  %p2078_p12 = scmp.lt.s32.totalorder %s2587_s15, %s2076_s26 }
 0x6bf   : > { %p2072_p6 = scmp.ne.s32.totalorder %s2587_s15, %s2071_s27 }
 0x6c0   : > { %v1382_v40 = vpop.f32.mrb[12].mxu1 }
 0x6c1   : > { %1387 = vrot.lane.b32.xlu0 %v1382_v40, %s2162_s29  ;;  %v1777_v41 = vpop.f32.mrb[13].mxu1  ;;  %p2073_p7 = pnand %p2072_p6, %p2670_p5 }
 0x6c3   : > { %p2074_p9 = pneg %p2073_p7 }
 0x72b   : > { %v1044_v42 = vpop.permute.xlu0 %1043 }
 0x72c   : > { %1047 = vst.msk [vmem:[#allocation2] sm:$0xff] %vm1046_vm3, %v1044_v42 }
 0x72f   : > { %v1216_v43 = vpop.permute.xlu1 %1215 }
 0x730   : > { %1219 = vst.msk [vmem:[#allocation2] sm:$0xff] %vm1218_vm4, %v1216_v43 }
 0x733   : > { %v1388_v0 = vpop.permute.xlu0 %1387 }
 0x734   : > { %1391 = vst.msk [vmem:[#allocation2] sm:$0xff] %vm1390_vm5, %v1388_v0 }
 0x73b   : > { %v1392_v44 = vld [vmem:[#allocation2] sm:$0xff] }
 0x73c   : > { %1787 = vmatmul.mubr.msk.f32.vlgmr.msra.gmra.mrb[8].mxu0 %vm484_vm1, %v1392_v44 }
 0x80f   : > { %v1469_v46 = vpop.f32.mrb[8].mxu0 }
 0x810   : > { %v1470_v47 = vadd.f32 %v1661_v45, %v1469_v46  ;;  %v1788_v48 = vpop.f32.mrb[9].mxu0 }
 0x812   : > { %v1473_v49 = vadd.f32 %v1470_v47, %v2481_v14  ;;  %v1663_v14 = vld [vmem:[%s2667_s10] ss:$0 sm:$0xff]  ;;  %s2077_s10 = scalar_lea.vmem %s2076_s26, 256 }
 0x813   : > { %p2079_p3 = scmp.lt.s32.totalorder %s2077_s10, %s2071_s27 }
 0x814   : > { %v1476_v50 = vsel %vm484_vm1, %v1473_v49, 0.0 }
 0x815   : > { %1477 = vadd.xlane.f32.xlu1 %v1476_v50  ;;  %p2080_p13 = por %p2079_p3, %p2078_p12 }
 0x817   : > { %p2081_p0 = pnand %p2080_p13, %p2074_p9 }
 0x8a2   : > { %v1478_v51 = vpop.xlane.xlu1 %1477 }
 0x8a3   : > { %v1480_v52 = vmul.f32 0.03125, %v1478_v51 }
 0x8a5   : > { %v1481_v53 = vsub.f32 %v1473_v49, %v1480_v52 }
 0x8a7   : > { %v1482_v54 = vmul.f32 %v1481_v53, %v1481_v53 }
 0x8a9   : > { %v1483_v55 = vsel %vm484_vm1, %v1482_v54, 0.0 }
 0x8aa   : > { %1484 = vadd.xlane.f32.xlu0 %v1483_v55 }
 0x937   : > { %v1485_v56 = vpop.xlane.xlu0 %1484 }
 0x938   : > { %v1486_v57 = vmul.f32 0.03125, %v1485_v56 }
 0x93a   : > { %v1487_v58 = vadd.f32 1e-06, %v1486_v57 }
 0x93c   : > { %1927 = vrsqrt.f32 %v1487_v58 }
 0x946   : > { %v1928_v59 = vpop.eup %1927 }
 0x947   : > { %v1489_v60 = vmul.f32 %v1928_v59, %v1481_v53 }
 0x949   : > { %v1496_v62 = vmul.f32 %v1663_v14, %v1489_v60 }
 0x94b   : > { %v1503_v63 = vadd.f32 %v1664_v61, %v1496_v62 }
 0x94d   : > { %1504 = vst.msk [vmem:[%s459_s28] sm:$0xff] %vm484_vm1, %v1503_v63 }
 0x94e   : > { %2084 = shalt.err (!%p2081_p0)
}
 0x94f   : > { %s2085_s1 = scalar_lea.hbm %s2585_s0, 128  ;;  %s2089_s9 = scalar_lea.hbm %s2669_s30, 256 }
 0x950   : > { %p2086_p2 = scmp.ne.s32.totalorder %s2585_s0, %s2085_s1  ;;  %p2090_p10 = scmp.lt.u32.totalorder %s2585_s0, %s2669_s30 }
 0x951   : > { %p2091_p11 = scmp.lt.u32.totalorder %s2089_s9, %s2085_s1  ;;  %p2093_p6 = scmp.lt.u32.totalorder %s2085_s1, %s2585_s0 }
 0x952   : > { %p2087_p8 = pnand %p2086_p2, %p2670_p5 }
 0x953   : > { %p2092_p1 = por %p2091_p11, %p2090_p10 }
 0x954   : > { %p2088_p4 = pneg %p2087_p8 }
 0x955   : > { %p2094_p7 = por %p2093_p6, %p2092_p1 }
 0x957   : > { %p2095_p9 = pnand %p2094_p7, %p2088_p4 }
 0x959   : > { %2098 = shalt.err (!%p2095_p9)
}
 0x95a   : > { %1831 = dma.vmem_to_hbm [thread:$0]  (%p2670_p5), %s2587_s15, 128, %s2585_s0, %s1506_s22  }
 0x95b PF: > { %s1531_s29 = sand.u32 1, %s2133_s17   ;;  %p2671_p12 = scmp.ne.s32.totalorder %s2659_s21, 0 }
 0x95c   : > { %p2672_p3 = scmp.ge.s32.totalorder %s2145_s20, 2  ;;  %s1532_s24 = scalar_lea.sflag [#allocation5], %s1531_s29 }
 0x95e   : > { %p1851_p13 = pnand %p2672_p3, %p2671_p12 }
 0x960   : > { %2128 = dma.done.wait (!%p1851_p13), %s1532_s24, 128  }
 0x961   : > { %2130 = vsyncadd (!%p1851_p13), %s1532_s24, 4294967168  ;;  %p26_p0 = scmp.ge.s32.totalorder %s2376_s16, 4   ;;  %s2673_s17 = smov %s2137_s18 }
 0x962   : > { %s2674_s18 = smov %s2141_s19  ;;  %s2675_s19 = smov %s2387_s14 }
 0x963   : > { %s2676_s20 = smov %s2376_s16  ;;  %28 = sbr.rel (!%p26_p0) target bundleno = 13 (0xd), region = 125 }
 0x96a   :  { %1537 = vsyncpa [#allocation4], 1 }
 0x96b   :  { %1539 = vsyncpa [#allocation4 + $0x1], 1 }
 0x96c   :  { %1540 = vsyncpa [#allocation7], 1 }
 0x96d   :  { %1541 = vsyncpa [#allocation10], 1 }
 0x96e   :  { %1542 = vsyncpa [#allocation5], 1 }
 0x96f   :  { %1544 = vsyncpa [#allocation5 + $0x1], 1 }

</bundles_post_ra>
